<compile_context>
chip_gen: v6e
topology: v6e:2x2x1
jax: 0.10.0
libtpu: 0.0.40
codegen_flags: <defaults>
</compile_context>

<pallas_src>
import functools

import jax
import jax.numpy as jnp
from jax.experimental import pallas as pl
from jax.experimental.pallas import tpu as pltpu

MOTION_WEIGHT = (1.0, 0.1)  # config['motion_weight'] = [moving, static]


def _motion_loss_kernel(gt_ref, pred_ref, mask_ref, sum_ref, cnt_ref, *,
                        use_weighted):
    """Weighted cross-entropy + masked reduction over one (nb, tile_h, W) slab.

    grid = (bs // nb, H // tile_h), both axes parallel.  Each step writes one
    (1, 1) partial loss-sum and one (1, 1) nonzero-mask count; the cross-step
    reduction happens in the wrapper, so there is no carried state.
    """
    # Slice-then-cast: leading-dim ref slices, casts elided when already f32.
    g0 = gt_ref[:, 0, :, :].astype(jnp.float32)      # (nb, tile_h, W)
    g1 = gt_ref[:, 1, :, :].astype(jnp.float32)
    p0 = pred_ref[:, 0, :, :].astype(jnp.float32)
    p1 = pred_ref[:, 1, :, :].astype(jnp.float32)
    m = mask_ref[:, 0, :, :].astype(jnp.float32)

    # 2-way log_softmax via the softplus form of logsumexp:
    #   lse = max(p0, p1) + log(1 + exp(-|p0 - p1|))   (1 exp + 1 log on EUP)
    lse = jnp.maximum(p0, p1) + jnp.log(1.0 + jnp.exp(-jnp.abs(p0 - p1)))

    # sum over the channel dim of (-gt * log_softmax(pred))
    ce = -(g0 * (p0 - lse) + g1 * (p1 - lse))

    if use_weighted:
        # np.argmax(axis=-1) picks the first max on ties -> class 0 ("moving")
        # when g0 >= g1 -> MOTION_WEIGHT[0].
        ce = ce * jnp.where(g0 >= g1,
                            jnp.float32(MOTION_WEIGHT[0]),
                            jnp.float32(MOTION_WEIGHT[1]))

    # Exact torch semantics for the denominator: count strictly nonzero mask
    # entries (do NOT assume the mask is binary).
    sum_ref[...] = jnp.sum(ce * m).reshape(1, 1)
    cnt_ref[...] = jnp.sum((m != 0.0).astype(jnp.float32)).reshape(1, 1)


def _divisors(n):
    return [d for d in range(1, n + 1) if n % d == 0]


def _pick_tiles(bs, H, W, px_bytes, target_bytes=4 << 20):
    """Pick (tile_h, nb) so the per-step input payload approaches ~4 MiB."""
    row_cands = [d for d in _divisors(H) if d % 8 == 0]
    tile_h = row_cands[0]
    for d in row_cands:
        if d * W * px_bytes <= target_bytes:
            tile_h = d
    nb = 1
    for d in _divisors(bs):
        if d * tile_h * W * px_bytes <= target_bytes:
            nb = d
    return tile_h, nb


def motion_loss(motion_gt, motion_pred, mask, *, use_weighted_loss=True,
                gt_channel_first=False, tile_rows=None, batch_block=None):
    """JAX/Pallas equivalent of the motion-loss branch of CalculateLoss.forward.

    motion_gt:   (bs, H, W, 2) NHWC ground truth (result of .view(-1, H, W, 2)),
                 or (bs, 2, H, W) NCHW if gt_channel_first=True (skips the
                 wrapper-side transpose / extra HBM pass).
    motion_pred: (bs, 2, H, W)   NCHW logits (any float dtype; cast in VMEM)
    mask:        (bs, Cm, H, W)  pixel_radar_map_gt in NCHW; only channel 0 used
    Returns a scalar float32 loss.
    """
    bs, c2, H, W = motion_pred.shape
    assert c2 == 2
    assert H % 8 == 0, "H must be a multiple of 8"
    assert mask.shape[0] == bs and mask.shape[2:] == (H, W)

    if gt_channel_first:
        assert motion_gt.shape == (bs, 2, H, W)
        gt_cf = motion_gt
    else:
        assert motion_gt.shape == (bs, H, W, 2)
        # Single fused relayout (same permute the torch module performs).
        # Prefer gt_channel_first=True when the producer can emit NCHW gt.
        gt_cf = jnp.transpose(motion_gt, (0, 3, 1, 2))

    px_bytes = (2 * gt_cf.dtype.itemsize + 2 * motion_pred.dtype.itemsize
                + mask.dtype.itemsize)
    auto_th, auto_nb = _pick_tiles(bs, H, W, px_bytes)
    tile_h = auto_th if tile_rows is None else tile_rows
    nb = auto_nb if batch_block is None else batch_block
    assert H % tile_h == 0 and tile_h % 8 == 0
    assert bs % nb == 0

    grid = (bs // nb, H // tile_h)
    step_bytes = nb * tile_h * W * px_bytes
    # Double-buffered inputs + f32 working temps, clamped to a safe range on
    # every generation (v5e scoped default 16 MiB, v7x physical 64 MiB).
    vmem_limit = int(min(max(4 * step_bytes + (8 << 20), 16 << 20), 32 << 20))

    kernel = functools.partial(_motion_loss_kernel,
                               use_weighted=use_weighted_loss)

    out_shape = jax.ShapeDtypeStruct(grid, jnp.float32)
    out_spec = pl.BlockSpec((1, 1), lambda b, r: (b, r))

    sums, cnts = pl.pallas_call(
        kernel,
        grid=grid,
        in_specs=[
            pl.BlockSpec((nb, 2, tile_h, W), lambda b, r: (b, 0, r, 0)),
            pl.BlockSpec((nb, 2, tile_h, W), lambda b, r: (b, 0, r, 0)),
            pl.BlockSpec((nb, 1, tile_h, W), lambda b, r: (b, 0, r, 0)),
        ],
        out_specs=(out_spec, out_spec),
        out_shape=(out_shape, out_shape),
        compiler_params=pltpu.CompilerParams(
            dimension_semantics=("parallel", "parallel"),
            vmem_limit_bytes=vmem_limit),
    )(gt_cf, motion_pred, mask)

    # sum(loss_speed * valid_mask) / torch.nonzero(valid_mask).size(0)
    return jnp.sum(sums) / jnp.sum(cnts)


def _motion_loss_ref(motion_gt, motion_pred, mask, use_weighted_loss=True):
    """Pure-JAX reference mirroring the PyTorch forward."""
    gt_nchw = jnp.transpose(motion_gt, (0, 3, 1, 2)).astype(jnp.float32)
    log_sm = jax.nn.log_softmax(motion_pred.astype(jnp.float32), axis=1)
    valid = mask[:, 0].astype(jnp.float32)
    loss_speed = jnp.sum(-gt_nchw * log_sm, axis=1)
    if use_weighted_loss:
        cls = jnp.argmax(motion_gt, axis=-1)  # 0 -> moving, 1 -> static
        wmap = jnp.where(cls == 0, MOTION_WEIGHT[0], MOTION_WEIGHT[1])
        loss_speed = loss_speed * wmap
    num = jnp.sum(loss_speed * valid)
    den = jnp.sum((valid != 0).astype(jnp.float32))
    return num / den


if __name__ == "__main__":
    key = jax.random.PRNGKey(0)
    k_gt, k_pred, k_mask = jax.random.split(key, 3)

    bs, H, W = 2, 16, 16  # small demo shapes (module hardcodes 256x256)

    # one-hot ground truth (moving vs static) per pixel
    cls = jax.random.bernoulli(k_gt, p=0.3, shape=(bs, H, W)).astype(jnp.int32)
    motion_gt = jax.nn.one_hot(cls, 2, dtype=jnp.float32)          # (bs,H,W,2)
    motion_pred = jax.random.normal(k_pred, (bs, 2, H, W), jnp.float32)
    mask = jax.random.bernoulli(k_mask, p=0.7,
                                shape=(bs, 1, H, W)).astype(jnp.float32)

    ref_w = _motion_loss_ref(motion_gt, motion_pred, mask, True)
    ref_u = _motion_loss_ref(motion_gt, motion_pred, mask, False)

    # default NHWC path (module semantics: wrapper does the permute)
    out_w = jax.block_until_ready(
        motion_loss(motion_gt, motion_pred, mask, use_weighted_loss=True))
    assert jnp.allclose(out_w, ref_w, rtol=1e-5, atol=1e-5), (out_w, ref_w)

    # unweighted path
    out_u = jax.block_until_ready(
        motion_loss(motion_gt, motion_pred, mask, use_weighted_loss=False))
    assert jnp.allclose(out_u, ref_u, rtol=1e-5, atol=1e-5), (out_u, ref_u)

    # channel-first fast path (producer emits NCHW gt; skips the transpose)
    gt_cf = jnp.transpose(motion_gt, (0, 3, 1, 2))
    out_cf = jax.block_until_ready(
        motion_loss(gt_cf, motion_pred, mask, use_weighted_loss=True,
                    gt_channel_first=True))
    assert jnp.allclose(out_cf, ref_w, rtol=1e-5, atol=1e-5), (out_cf, ref_w)

    print("KERNEL_OK")
</pallas_src>

<mosaic_0001>
module attributes {stable_mosaic.version = 11 : i64} {
  func.func @_motion_loss_kernel(%arg0: i32, %arg1: i32, %arg2: memref<2x2x16x16xf32, #tpu.memory_space<vmem>>, %arg3: memref<2x2x16x16xf32, #tpu.memory_space<vmem>>, %arg4: memref<2x1x16x16xf32, #tpu.memory_space<vmem>>, %arg5: memref<1x1xf32, #tpu.memory_space<vmem>>, %arg6: memref<1x1xf32, #tpu.memory_space<vmem>>) attributes {dimension_semantics = [#tpu.dimension_semantics<parallel>, #tpu.dimension_semantics<parallel>], iteration_bounds = array<i64: 1, 1>, scalar_prefetch = 0 : i64, scratch_operands = 0 : i64, tpu.core_type = #tpu.core_type<tc>, window_params = [{transform_indices = @transform_0, window_bounds = array<i64: 2, 2, 16, 16>}, {transform_indices = @transform_1, window_bounds = array<i64: 2, 2, 16, 16>}, {transform_indices = @transform_2, window_bounds = array<i64: 2, 1, 16, 16>}, {transform_indices = @transform_3, window_bounds = array<i64: 1, 1>}, {transform_indices = @transform_4, window_bounds = array<i64: 1, 1>}]} {
    %c0 = arith.constant 0 : index
    %c0_0 = arith.constant 0 : index
    %c0_1 = arith.constant 0 : index
    %c0_2 = arith.constant 0 : index
    %0 = vector.load %arg2[%c0, %c0_0, %c0_1, %c0_2] : memref<2x2x16x16xf32, #tpu.memory_space<vmem>>, vector<2x1x16x16xf32>
    %1 = vector.shape_cast %0 : vector<2x1x16x16xf32> to vector<2x16x16xf32>
    %c0_3 = arith.constant 0 : index
    %c1 = arith.constant 1 : index
    %c0_4 = arith.constant 0 : index
    %c0_5 = arith.constant 0 : index
    %2 = vector.load %arg2[%c0_3, %c1, %c0_4, %c0_5] : memref<2x2x16x16xf32, #tpu.memory_space<vmem>>, vector<2x1x16x16xf32>
    %3 = vector.shape_cast %2 : vector<2x1x16x16xf32> to vector<2x16x16xf32>
    %c0_6 = arith.constant 0 : index
    %c0_7 = arith.constant 0 : index
    %c0_8 = arith.constant 0 : index
    %c0_9 = arith.constant 0 : index
    %4 = vector.load %arg3[%c0_6, %c0_7, %c0_8, %c0_9] : memref<2x2x16x16xf32, #tpu.memory_space<vmem>>, vector<2x1x16x16xf32>
    %5 = vector.shape_cast %4 : vector<2x1x16x16xf32> to vector<2x16x16xf32>
    %c0_10 = arith.constant 0 : index
    %c1_11 = arith.constant 1 : index
    %c0_12 = arith.constant 0 : index
    %c0_13 = arith.constant 0 : index
    %6 = vector.load %arg3[%c0_10, %c1_11, %c0_12, %c0_13] : memref<2x2x16x16xf32, #tpu.memory_space<vmem>>, vector<2x1x16x16xf32>
    %7 = vector.shape_cast %6 : vector<2x1x16x16xf32> to vector<2x16x16xf32>
    %c0_14 = arith.constant 0 : index
    %c0_15 = arith.constant 0 : index
    %c0_16 = arith.constant 0 : index
    %c0_17 = arith.constant 0 : index
    %8 = vector.load %arg4[%c0_14, %c0_15, %c0_16, %c0_17] : memref<2x1x16x16xf32, #tpu.memory_space<vmem>>, vector<2x1x16x16xf32>
    %9 = vector.shape_cast %8 : vector<2x1x16x16xf32> to vector<2x16x16xf32>
    %10 = arith.maximumf %5, %7 : vector<2x16x16xf32>
    %11 = arith.subf %5, %7 : vector<2x16x16xf32>
    %12 = math.absf %11 : vector<2x16x16xf32>
    %cst = arith.constant 0.000000e+00 : f32
    %13 = vector.broadcast %cst : f32 to vector<2x16x16xf32>
    %14 = arith.subf %13, %12 : vector<2x16x16xf32>
    %15 = math.exp %14 : vector<2x16x16xf32>
    %cst_18 = arith.constant 1.000000e+00 : f32
    %16 = vector.broadcast %cst_18 : f32 to vector<2x16x16xf32>
    %17 = arith.addf %16, %15 : vector<2x16x16xf32>
    %18 = math.log %17 : vector<2x16x16xf32>
    %19 = arith.addf %10, %18 : vector<2x16x16xf32>
    %20 = arith.subf %5, %19 : vector<2x16x16xf32>
    %21 = arith.mulf %1, %20 : vector<2x16x16xf32>
    %22 = arith.subf %7, %19 : vector<2x16x16xf32>
    %23 = arith.mulf %3, %22 : vector<2x16x16xf32>
    %24 = arith.addf %21, %23 : vector<2x16x16xf32>
    %cst_19 = arith.constant 0.000000e+00 : f32
    %25 = vector.broadcast %cst_19 : f32 to vector<2x16x16xf32>
    %26 = arith.subf %25, %24 : vector<2x16x16xf32>
    %27 = arith.cmpf oge, %1, %3 : vector<2x16x16xf32>
    %cst_20 = arith.constant 1.000000e+00 : f32
    %cst_21 = arith.constant 1.000000e-01 : f32
    %28 = vector.broadcast %cst_20 : f32 to vector<2x16x16xf32>
    %29 = vector.broadcast %cst_21 : f32 to vector<2x16x16xf32>
    %30 = arith.select %27, %28, %29 : vector<2x16x16xi1>, vector<2x16x16xf32>
    %31 = arith.mulf %26, %30 : vector<2x16x16xf32>
    %32 = arith.mulf %31, %9 : vector<2x16x16xf32>
    %33 = vector.shape_cast %32 : vector<2x16x16xf32> to vector<1x2x16x16xf32>
    %cst_22 = arith.constant dense<0.000000e+00> : vector<1xf32>
    %34 = vector.multi_reduction <add>, %33, %cst_22 [1, 2, 3] : vector<1x2x16x16xf32> to vector<1xf32>
    %35 = vector.shape_cast %34 : vector<1xf32> to vector<1x1x1x1xf32>
    %36 = vector.extract %35[0, 0, 0, 0] : f32 from vector<1x1x1x1xf32>
    %37 = vector.broadcast %36 : f32 to vector<1x1xf32>
    %c0_23 = arith.constant 0 : index
    %c0_24 = arith.constant 0 : index
    %38 = vector.load %arg5[%c0_23, %c0_24] : memref<1x1xf32, #tpu.memory_space<vmem>>, vector<1x1xf32>
    tpu.vector_store %arg5[%c0_23, %c0_24], %37 {strides = array<i32>} : memref<1x1xf32, #tpu.memory_space<vmem>>, vector<1x1xf32>,
    %cst_25 = arith.constant 0.000000e+00 : f32
    %39 = vector.broadcast %cst_25 : f32 to vector<2x16x16xf32>
    %40 = arith.cmpf one, %9, %39 : vector<2x16x16xf32>
    %41 = arith.extui %40 : vector<2x16x16xi1> to vector<2x16x16xi32>
    %42 = arith.sitofp %41 : vector<2x16x16xi32> to vector<2x16x16xf32>
    %43 = vector.shape_cast %42 : vector<2x16x16xf32> to vector<1x2x16x16xf32>
    %cst_26 = arith.constant dense<0.000000e+00> : vector<1xf32>
    %44 = vector.multi_reduction <add>, %43, %cst_26 [1, 2, 3] : vector<1x2x16x16xf32> to vector<1xf32>
    %45 = vector.shape_cast %44 : vector<1xf32> to vector<1x1x1x1xf32>
    %46 = vector.extract %45[0, 0, 0, 0] : f32 from vector<1x1x1x1xf32>
    %47 = vector.broadcast %46 : f32 to vector<1x1xf32>
    %c0_27 = arith.constant 0 : index
    %c0_28 = arith.constant 0 : index
    %48 = vector.load %arg6[%c0_27, %c0_28] : memref<1x1xf32, #tpu.memory_space<vmem>>, vector<1x1xf32>
    tpu.vector_store %arg6[%c0_27, %c0_28], %47 {strides = array<i32>} : memref<1x1xf32, #tpu.memory_space<vmem>>, vector<1x1xf32>,
    return
  }
  func.func @transform_0(%arg0: i32, %arg1: i32) -> (i32, i32, i32, i32) {
    %c0_i32 = arith.constant 0 : i32
    %c0_i32_0 = arith.constant 0 : i32
    %c0_i32_1 = arith.constant 0 : i32
    return %arg0, %c0_i32, %arg1, %c0_i32_0 : i32, i32, i32, i32
  }
  func.func @transform_1(%arg0: i32, %arg1: i32) -> (i32, i32, i32, i32) {
    %c0_i32 = arith.constant 0 : i32
    %c0_i32_0 = arith.constant 0 : i32
    %c0_i32_1 = arith.constant 0 : i32
    return %arg0, %c0_i32, %arg1, %c0_i32_0 : i32, i32, i32, i32
  }
  func.func @transform_2(%arg0: i32, %arg1: i32) -> (i32, i32, i32, i32) {
    %c0_i32 = arith.constant 0 : i32
    %c0_i32_0 = arith.constant 0 : i32
    %c0_i32_1 = arith.constant 0 : i32
    return %arg0, %c0_i32, %arg1, %c0_i32_0 : i32, i32, i32, i32
  }
  func.func @transform_3(%arg0: i32, %arg1: i32) -> (i32, i32) {
    %c0_i32 = arith.constant 0 : i32
    return %arg0, %arg1 : i32, i32
  }
  func.func @transform_4(%arg0: i32, %arg1: i32) -> (i32, i32) {
    %c0_i32 = arith.constant 0 : i32
    return %arg0, %arg1 : i32, i32
  }
}

</mosaic_0001>

<bundles_post_ra>
// kernel: tpu_custom_call.1
= control target key start
LH: loop header
LB: loop body
LE: loop exit
PB: predicated region body
PF: predicated region fallthrough
CT: control target
= control target key end

     0   :  { %10 = vsyncpa [#allocation3], 0  ;;  %s487_s0 = inlined_call_operand.hbm [shape: f32[2,2,16,16], index: 0, kind: input, shape index: {}]   ;;  %s488_s1 = inlined_call_operand.hbm [shape: f32[2,2,16,16], index: 1, kind: input, shape index: {}]   ;;  %s489_s2 = inlined_call_operand.hbm [shape: f32[2,1,16,16], index: 2, kind: input, shape index: {}]   ;;  %s490_s3 = inlined_call_operand.hbm [shape: f32[1,1], index: 3, kind: output, shape index: {0}]   ;;  %s491_s4 = inlined_call_operand.hbm [shape: f32[1,1], index: 4, kind: output, shape index: {1}]  }
   0x1   :  { %11 = vsyncpa [#allocation6], 0 }
   0x2   :  { %12 = vsyncpa [#allocation4], 0 }
   0x3   :  { %13 = vsyncpa [#allocation10], 0  ;;  %s382_s15 = smov [#allocation5]   ;;  %s383_s17 = smov [#allocation2]  }
   0x4   :  { %s31_s16 = sshll.u32 %s382_s15, 4  ;;  %s19_s18 = sshll.u32 %s383_s17, 4  ;;  %s32_s16 = int_to_ptr.vmem [resolvable:$true] %s31_s16  ;;  %s20_s18 = int_to_ptr.vmem [resolvable:$true] %s19_s18 }
   0x5   :  { %s282_s19 = scalar_lea.vmem %s32_s16, 1024  ;;  %p287_p1 = scmp.lt.s32.totalorder %s32_s16, %s32_s16 }
   0x6   :  { %p283_p0 = scmp.ne.s32.totalorder %s32_s16, %s282_s19  ;;  %p288_p2 = scmp.lt.s32.totalorder %s282_s19, %s282_s19 }
   0x8   :  { %p289_p3 = por %p288_p2, %p287_p1 }
   0xa   :  { %p290_p4 = pnand %p289_p3, %p283_p0 }
   0xc   :  { %293 = shalt.err (!%p290_p4)
}
   0xd   :  { %s384_s20 = smov 128   ;;  %s385_s21 = smov 8  }
   0xe   :  { %37 = dma.hbm_to_vmem [thread:$0]  %s488_s1, 1024, %s32_s16, [#allocation6], %s384_s20, %s384_s20, %s385_s21  }
   0xf   :  { %s302_s24 = scalar_lea.vmem %s20_s18, 1024  ;;  %p307_p6 = scmp.lt.s32.totalorder %s20_s18, %s20_s18 }
  0x10   :  { %p303_p5 = scmp.ne.s32.totalorder %s20_s18, %s302_s24  ;;  %p308_p7 = scmp.lt.s32.totalorder %s302_s24, %s302_s24 }
  0x12   :  { %p309_p8 = por %p308_p7, %p307_p6 }
  0x14   :  { %p310_p9 = pnand %p309_p8, %p303_p5 }
  0x16   :  { %313 = shalt.err (!%p310_p9)
}
  0x17   :  { %25 = dma.hbm_to_vmem [thread:$0]  %s487_s0, 1024, %s20_s18, [#allocation3], %s384_s20, %s384_s20, %s385_s21  }
  0x18   :  { %s386_s27 = smov [#allocation7]  }
  0x19   :  { %s43_s28 = sshll.u32 %s386_s27, 4  ;;  %s44_s28 = int_to_ptr.vmem [resolvable:$true] %s43_s28 }
  0x1a   :  { %s322_s29 = scalar_lea.vmem %s44_s28, 512  ;;  %p327_p11 = scmp.lt.s32.totalorder %s44_s28, %s44_s28 }
  0x1b   :  { %p323_p10 = scmp.ne.s32.totalorder %s44_s28, %s322_s29  ;;  %p328_p12 = scmp.lt.s32.totalorder %s322_s29, %s322_s29 }
  0x1d   :  { %p329_p13 = por %p328_p12, %p327_p11 }
  0x1f   :  { %p330_p0 = pnand %p329_p13, %p323_p10 }
  0x21   :  { %333 = shalt.err (!%p330_p0)
}
  0x22   :  { %49 = dma.hbm_to_vmem [thread:$0]  %s489_s2, 512, %s44_s28, [#allocation6], %s384_s20, %s384_s20, %s385_s21  }
  0x23   :  { %374 = dma.done.wait [#allocation3], 1024  }
  0x24   :  { %375 = vsyncadd [#allocation3], 4294966272 }
  0x25   :  { %376 = dma.done.wait [#allocation6], 1536  }
  0x26   :  { %377 = vsyncadd [#allocation6], 4294965760  ;;  %v425_v0 = vld [vmem:[#allocation5] sm:$0xff]  ;;  %v427_v1 = vld [vmem:[#allocation5 + $0x8] sm:$0xff]  ;;  %vm161_vm7 = vcmask 130048   ;;  %s389_s0 = smov [#allocation8]  }
  0x27   :  { %v429_v2 = vld [vmem:[#allocation5 + $0x20] sm:$0xff]  ;;  %v431_v3 = vld [vmem:[#allocation5 + $0x28] sm:$0xff]  ;;  %v433_v4 = vld [vmem:[#allocation5 + $0x10] sm:$0xff]  ;;  %s217_s2 = sshll.u32 %s389_s0, 4  ;;  %vm179_vm9 = vcmask 0   ;;  %s390_s6 = smov [#allocation9]   ;;  %s218_s2 = int_to_ptr.vmem [resolvable:$true] %s217_s2 }
  0x28   :  { %v435_v5 = vld [vmem:[#allocation5 + $0x18] sm:$0xff]  ;;  %v437_v6 = vld [vmem:[#allocation5 + $0x30] sm:$0xff]  ;;  %v85_v8 = vsub.f32 %v425_v0, %v433_v4  ;;  %v81_v32 = vmax.f32 %v425_v0, %v433_v4  ;;  %v59_v36 = vld [vmem:[#allocation2] sm:$0xff]  ;;  %s227_s7 = sshll.u32 %s390_s6, 4  ;;  %s334_s8 = scalar_lea.vmem %s218_s2, 16  ;;  %s228_s7 = int_to_ptr.vmem [resolvable:$true] %s227_s7 }
  0x29   :  { %v439_v7 = vld [vmem:[#allocation5 + $0x38] sm:$0xff]  ;;  %v86_v9 = vsub.f32 %v427_v1, %v435_v5  ;;  %v87_v10 = vsub.f32 %v429_v2, %v437_v6  ;;  %v82_v34 = vmax.f32 %v427_v1, %v435_v5  ;;  %v60_v37 = vld [vmem:[#allocation2 + $0x8] sm:$0xff]  ;;  %v83_v38 = vmax.f32 %v429_v2, %v437_v6  ;;  %v61_v41 = vld [vmem:[#allocation2 + $0x20] sm:$0xff]  ;;  %p335_p1 = scmp.ne.s32.totalorder %s218_s2, %s334_s8  ;;  %s338_s9 = scalar_lea.vmem %s218_s2, 32 }
  0x2a   :  { %v88_v11 = vsub.f32 %v431_v3, %v439_v7  ;;  %v89_v12 = vand.u32 2147483647, %v85_v8  ;;  %v64_v42 = vld [vmem:[#allocation2 + $0x10] sm:$0xff]  ;;  %v65_v43 = vld [vmem:[#allocation2 + $0x18] sm:$0xff]  ;;  %v84_v44 = vmax.f32 %v431_v3, %v439_v7  ;;  %v62_v47 = vld [vmem:[#allocation2 + $0x28] sm:$0xff]  ;;  %p339_p2 = scmp.lt.s32.totalorder %s218_s2, %s218_s2  ;;  %p340_p3 = scmp.lt.s32.totalorder %s338_s9, %s334_s8 }
  0x2b   :  { %v90_v13 = vand.u32 2147483647, %v86_v9  ;;  %v91_v14 = vand.u32 2147483647, %v87_v10  ;;  %v66_v48 = vld [vmem:[#allocation2 + $0x30] sm:$0xff]  ;;  %v67_v49 = vld [vmem:[#allocation2 + $0x38] sm:$0xff]  ;;  %vm145_vm0 = vcmp.ge.f32.partialorder %v59_v36, %v64_v42  ;;  %vm146_vm1 = vcmp.ge.f32.partialorder %v60_v37, %v65_v43 }
  0x2c   :  { %v92_v15 = vand.u32 2147483647, %v88_v11  ;;  %v93_v16 = vsub.f32 0.0, %v89_v12  ;;  %v77_v52 = vld [vmem:[#allocation7] sm:$0xff]  ;;  %vm147_vm2 = vcmp.ge.f32.partialorder %v61_v41, %v66_v48  ;;  %vm148_vm3 = vcmp.ge.f32.partialorder %v62_v47, %v67_v49  ;;  %v78_v55 = vld [vmem:[#allocation7 + $0x8] sm:$0xff]  ;;  %p341_p4 = por %p340_p3, %p339_p2 }
  0x2d   :  { %v94_v17 = vsub.f32 0.0, %v90_v13  ;;  %v95_v18 = vsub.f32 0.0, %v91_v14  ;;  %vm181_vm4 = vcmp.ne.f32.partialorder %v77_v52, 0.0  ;;  %vm182_vm5 = vcmp.ne.f32.partialorder %v78_v55, 0.0 }
  0x2e   :  { %v96_v19 = vsub.f32 0.0, %v92_v15  ;;  %v97_v20 = vmul.f32 1.442695, %v93_v16  ;;  %v387_v15 = vmov 0.1   ;;  %p342_p5 = pnand %p341_p4, %p335_p1 }
  0x2f   :  { %v99_v21 = vmul.f32 1.442695, %v94_v17  ;;  %v101_v22 = vmul.f32 1.442695, %v95_v18  ;;  %v79_v18 = vld [vmem:[#allocation7 + $0x10] sm:$0xff] }
  0x30   :  { %v103_v23 = vmul.f32 1.442695, %v96_v19  ;;  %258 = vpow2.f32 %v97_v20  ;;  %v388_v20 = vmov 0.0   ;;  %vm183_vm6 = vcmp.ne.f32.partialorder %v79_v18, 0.0 }
  0x31   :  { %260 = vpow2.f32 %v99_v21 }
  0x32   :  { %262 = vpow2.f32 %v101_v22 }
  0x33   :  { %264 = vpow2.f32 %v103_v23  ;;  %v151_v23 = vsel %vm147_vm2, 1.0, %v387_v15 }
  0x3d   :  { %v259_v24 = vpop.eup %258 }
  0x3e   :  { %v261_v25 = vpop.eup %260  ;;  %v105_v26 = vadd.f32 1.0, %v259_v24 }
  0x3f   :  { %v263_v27 = vpop.eup %262  ;;  %v106_v28 = vadd.f32 1.0, %v261_v25  ;;  %v152_v25 = vsel %vm148_vm3, 1.0, %v387_v15 }
  0x40   :  { %v265_v29 = vpop.eup %264  ;;  %v107_v30 = vadd.f32 1.0, %v263_v27  ;;  %266 = vlog2.f32 %v105_v26 }
  0x41   :  { %v108_v31 = vadd.f32 1.0, %v265_v29  ;;  %268 = vlog2.f32 %v106_v28 }
  0x42   :  { %270 = vlog2.f32 %v107_v30 }
  0x43   :  { %272 = vlog2.f32 %v108_v31  ;;  %v80_v31 = vld [vmem:[#allocation7 + $0x18] sm:$0xff] }
  0x44   :  { %vm184_vm8 = vcmp.ne.f32.partialorder %v80_v31, 0.0 }
  0x4d   :  { %v267_v33 = vpop.eup %266 }
  0x4e   :  { %v269_v35 = vpop.eup %268  ;;  %v110_v39 = vmul.f32 0.6931472, %v267_v33 }
  0x4f   :  { %v271_v40 = vpop.eup %270  ;;  %v112_v45 = vmul.f32 0.6931472, %v269_v35 }
  0x50   :  { %v273_v46 = vpop.eup %272  ;;  %v114_v50 = vmul.f32 0.6931472, %v271_v40  ;;  %v117_v51 = vadd.f32 %v110_v39, %v81_v32 }
  0x51   :  { %v116_v53 = vmul.f32 0.6931472, %v273_v46  ;;  %v118_v54 = vadd.f32 %v112_v45, %v82_v34  ;;  %v243_v34 = vsel %vm183_vm6, 1.0, %v388_v20  ;;  %v244_v45 = vsel %vm184_vm8, 1.0, %v388_v20 }
  0x52   :  { %v119_v56 = vadd.f32 %v114_v50, %v83_v38  ;;  %v121_v57 = vsub.f32 %v425_v0, %v117_v51  ;;  %v129_v58 = vsub.f32 %v433_v4, %v117_v51 }
  0x53   :  { %v120_v59 = vadd.f32 %v116_v53, %v84_v44  ;;  %v122_v60 = vsub.f32 %v427_v1, %v118_v54  ;;  %v130_v61 = vsub.f32 %v435_v5, %v118_v54  ;;  %v149_v1 = vsel %vm145_vm0, 1.0, %v387_v15 }
  0x54   :  { %v123_v62 = vsub.f32 %v429_v2, %v119_v56  ;;  %v125_v63 = vmul.f32 %v121_v57, %v59_v36  ;;  %v131_v8 = vsub.f32 %v437_v6, %v119_v56  ;;  %v133_v9 = vmul.f32 %v129_v58, %v64_v42 }
  0x55   :  { %v124_v10 = vsub.f32 %v431_v3, %v120_v59  ;;  %v126_v11 = vmul.f32 %v122_v60, %v60_v37  ;;  %v132_v0 = vsub.f32 %v439_v7, %v120_v59  ;;  %v134_v12 = vmul.f32 %v130_v61, %v65_v43 }
  0x56   :  { %v127_v4 = vmul.f32 %v123_v62, %v61_v41  ;;  %v135_v13 = vmul.f32 %v131_v8, %v66_v48  ;;  %v137_v14 = vadd.f32 %v133_v9, %v125_v63  ;;  %v150_v2 = vsel %vm146_vm1, 1.0, %v387_v15 }
  0x57   :  { %v128_v5 = vmul.f32 %v124_v10, %v62_v47  ;;  %v136_v16 = vmul.f32 %v132_v0, %v67_v49  ;;  %v138_v17 = vadd.f32 %v134_v12, %v126_v11  ;;  %v241_v3 = vsel %vm181_vm4, 1.0, %v388_v20 }
  0x58   :  { %v139_v6 = vadd.f32 %v135_v13, %v127_v4  ;;  %v141_v19 = vsub.f32 0.0, %v137_v14  ;;  %v242_v7 = vsel %vm182_vm5, 1.0, %v388_v20  ;;  %v193_v29 = vsel %vm161_vm7, %v241_v3, 0.0 }
  0x59   :  { %v140_v21 = vadd.f32 %v136_v16, %v128_v5  ;;  %v142_v22 = vsub.f32 0.0, %v138_v17  ;;  %v194_v30 = vsel %vm161_vm7, %v242_v7, 0.0  ;;  %v196_v42 = vsel %vm161_vm7, %v243_v34, 0.0 }
  0x5a   :  { %v143_v24 = vsub.f32 0.0, %v139_v6  ;;  %v153_v26 = vmul.f32 %v149_v1, %v141_v19  ;;  %v195_v39 = vadd.f32 %v194_v30, %v193_v29  ;;  %v198_v49 = vsel %vm161_vm7, %v244_v45, 0.0 }
  0x5b   :  { %v144_v27 = vsub.f32 0.0, %v140_v21  ;;  %v154_v28 = vmul.f32 %v150_v2, %v142_v22 }
  0x5c   :  { %v155_v32 = vmul.f32 %v151_v23, %v143_v24  ;;  %v157_v33 = vmul.f32 %v153_v26, %v77_v52  ;;  %v197_v48 = vadd.f32 %v196_v42, %v195_v39 }
  0x5d   :  { %v156_v35 = vmul.f32 %v152_v25, %v144_v27  ;;  %v158_v36 = vmul.f32 %v154_v28, %v78_v55 }
  0x5e   :  { %v159_v37 = vmul.f32 %v155_v32, %v79_v18  ;;  %v162_v38 = vsel %vm161_vm7, %v157_v33, 0.0  ;;  %v199_v51 = vadd.f32 %v198_v49, %v197_v48 }
  0x5f   :  { %v160_v40 = vmul.f32 %v156_v35, %v80_v31  ;;  %v163_v41 = vsel %vm161_vm7, %v158_v36, 0.0 }
  0x60   :  { %v164_v43 = vadd.f32 %v163_v41, %v162_v38  ;;  %v165_v44 = vsel %vm161_vm7, %v159_v37, 0.0 }
  0x61   :  { %v167_v46 = vsel %vm161_vm7, %v160_v40, 0.0 }
  0x62   :  { %v166_v47 = vadd.f32 %v165_v44, %v164_v43 }
  0x64   :  { %v168_v50 = vadd.f32 %v167_v46, %v166_v47 }
  0x66   :  { %169 = vadd.xlane.f32.xlu0 %v168_v50 }
  0x6a   :  { %200 = vadd.xlane.f32.xlu0 %v199_v51 }
  0xef   :  { %v170_v52 = vpop.xlane.xlu0 %169 }
  0xf0   :  { %v171_v53 = vrot.slane %v170_v52, 4 }
  0xf2   :  { %v172_v54 = vadd.f32 %v171_v53, %v170_v52 }
  0xf3   :  { %v201_v55 = vpop.xlane.xlu0 %200 }
  0xf4   :  { %v173_v56 = vrot.slane %v172_v54, 2  ;;  %v202_v57 = vrot.slane %v201_v55, 4 }
  0xf6   :  { %v203_v58 = vadd.f32 %v202_v57, %v201_v55  ;;  %v174_v59 = vadd.f32 %v173_v56, %v172_v54 }
  0xf8   :  { %v204_v60 = vrot.slane %v203_v58, 2  ;;  %v175_v61 = vrot.slane %v174_v59, 1 }
  0xfa   :  { %v205_v62 = vadd.f32 %v204_v60, %v203_v58  ;;  %v176_v63 = vadd.f32 %v175_v61, %v174_v59 }
  0xfc   :  { %245 = vpush %v176_v63  ;;  %v206_v8 = vrot.slane %v205_v62, 1 }
  0xfe   :  { %v207_v9 = vadd.f32 %v206_v8, %v205_v62 }
 0x100   :  { %247 = vpush %v207_v9 }
 0x12d   :  { %s246_s5 = spop %245 }
 0x12e   :  { %v178_v10 = vstv %s246_s5 }
 0x12f   :  { %180 = vst.msk [vmem:[#allocation8] sm:$0x1] %vm179_vm9, %v178_v10 }
 0x130   :  { %345 = shalt.err (!%p342_p5)
}
 0x131   :  { %220 = dma.vmem_to_hbm [thread:$0]  %s218_s2, 16, %s490_s3, [#allocation4]  }
 0x132   :  { %s248_s12 = spop %247  ;;  %s354_s13 = scalar_lea.vmem %s228_s7, 16 }
 0x133   :  { %v209_v11 = vstv %s248_s12  ;;  %p355_p6 = scmp.ne.s32.totalorder %s228_s7, %s354_s13  ;;  %s358_s14 = scalar_lea.vmem %s228_s7, 32 }
 0x134   :  { %210 = vst.msk [vmem:[#allocation9] sm:$0x1] %vm179_vm9, %v209_v11  ;;  %p359_p7 = scmp.lt.s32.totalorder %s228_s7, %s228_s7  ;;  %p360_p8 = scmp.lt.s32.totalorder %s358_s14, %s354_s13 }
 0x136   :  { %p361_p9 = por %p360_p8, %p359_p7 }
 0x138   :  { %p362_p10 = pnand %p361_p9, %p355_p6 }
 0x13a   :  { %365 = shalt.err (!%p362_p10)
}
 0x13b   :  { %230 = dma.vmem_to_hbm [thread:$0]  %s228_s7, 16, %s491_s4, [#allocation10]  }
 0x13c   :  { %378 = dma.done.wait [#allocation4], 16  }
 0x13d   :  { %379 = vsyncadd [#allocation4], 4294967280 }
 0x13e   :  { %380 = dma.done.wait [#allocation10], 16  }
 0x13f   :  { %381 = vsyncadd [#allocation10], 4294967280 }
 0x140   :  { %237 = vsyncpa [#allocation3], 1 }
 0x141   :  { %238 = vsyncpa [#allocation6], 1 }
 0x142   :  { %239 = vsyncpa [#allocation4], 1 }
 0x143   :  { %240 = vsyncpa [#allocation10], 1 }

</bundles_post_ra>
